<compile_context>
chip_gen: v7x
topology: tpu7x:2x2x1
jax: 0.10.0
libtpu: 0.0.40
codegen_flags: <defaults>
</compile_context>

<pallas_src>
import jax
import jax.numpy as jnp
from jax.experimental import pallas as pl
from jax.experimental.pallas import tpu as pltpu


# ---------------------------------------------------------------------------
# Pallas kernels
# ---------------------------------------------------------------------------
def _linear_relu_kernel(x_ref, w_ref, b_ref, o_ref):
    # In-kernel VPU cast of x (fp32 tile -> bf16 vregs): hides under the DMA,
    # no separate wrapper-side cast pass over x in HBM.
    x = x_ref[...].astype(w_ref.dtype)
    acc = jnp.dot(x, w_ref[...], preferred_element_type=jnp.float32)
    o_ref[...] = jnp.maximum(acc + b_ref[...], 0.0).astype(o_ref.dtype)


def _mlp2_relu_kernel(x_ref, w1_ref, b1_ref, w2_ref, b2_ref, o_ref):
    x = x_ref[...].astype(w1_ref.dtype)
    h = jnp.dot(x, w1_ref[...], preferred_element_type=jnp.float32)
    # Fused bias + ReLU + downcast: the inter-matmul hand-off is bf16, so the
    # (tile_m, H) intermediate never exists as an fp32 staging buffer.
    h = jnp.maximum(h + b1_ref[...], 0.0).astype(w2_ref.dtype)
    y = jnp.dot(h, w2_ref[...], preferred_element_type=jnp.float32)
    o_ref[...] = jnp.maximum(y + b2_ref[...], 0.0).astype(o_ref.dtype)


def fused_mlp(x, w1, b1, w2=None, b2=None, *, tile_m=512, out_dtype=jnp.float32):
    """Fused (1- or 2-layer) Linear+ReLU stack as a single pallas_call.

    x: (N, D) fp32 (cast to bf16 inside the kernel); w1/(w2): bf16, stored
    (in, out); b1/(b2): fp32, (1, H)/(1, O).  fp32 MXU accumulation.
    Rows are tiled `tile_m` at a time with a cdiv grid; the trailing partial
    block is edge-masked by Pallas (no padding copies).  tile_m=512 keeps the
    grid >= 2 at moderate N (both v7x TCs busy); raise it for large N on
    v5e/v6e (single TC, 128 MiB VMEM) to amortize per-step overhead.
    """
    N, D = x.shape
    H = w1.shape[1]
    if b1.ndim == 1:
        b1 = b1.reshape(1, H)

    grid = (pl.cdiv(N, tile_m),)

    # Grid-invariant weight/bias blocks: constant index_map -> fetched once.
    # NOTE(v7x): pl.Buffered(1) on these specs would halve their VMEM
    # residency; at 32x128 / 128x128 weights it is noise, so the default
    # (portable) pipelining is kept.
    if w2 is None:
        O = H
        kernel = _linear_relu_kernel
        in_specs = [
            pl.BlockSpec((tile_m, D), lambda i: (i, 0)),
            pl.BlockSpec((D, H), lambda i: (0, 0)),
            pl.BlockSpec((1, H), lambda i: (0, 0)),
        ]
        args = (x, w1, b1)
        flops = 2 * N * D * H
        weight_bytes = (w1.size * w1.dtype.itemsize
                        + b1.size * b1.dtype.itemsize)
    else:
        O = w2.shape[1]
        if b2.ndim == 1:
            b2 = b2.reshape(1, O)
        kernel = _mlp2_relu_kernel
        in_specs = [
            pl.BlockSpec((tile_m, D), lambda i: (i, 0)),
            pl.BlockSpec((D, H), lambda i: (0, 0)),
            pl.BlockSpec((1, H), lambda i: (0, 0)),
            pl.BlockSpec((H, O), lambda i: (0, 0)),
            pl.BlockSpec((1, O), lambda i: (0, 0)),
        ]
        args = (x, w1, b1, w2, b2)
        flops = 2 * N * D * H + 2 * N * H * O
        weight_bytes = (w1.size * w1.dtype.itemsize + b1.size * b1.dtype.itemsize
                        + w2.size * w2.dtype.itemsize + b2.size * b2.dtype.itemsize)

    out_itemsize = jnp.dtype(out_dtype).itemsize
    cost = pl.CostEstimate(
        flops=int(flops),
        transcendentals=0,
        bytes_accessed=int(x.size * x.dtype.itemsize
                           + weight_bytes + N * O * out_itemsize),
    )

    return pl.pallas_call(
        kernel,
        out_shape=jax.ShapeDtypeStruct((N, O), out_dtype),
        grid_spec=pltpu.PrefetchScalarGridSpec(
            num_scalar_prefetch=0,
            grid=grid,
            in_specs=in_specs,
            out_specs=pl.BlockSpec((tile_m, O), lambda i: (i, 0)),
        ),
        compiler_params=pltpu.CompilerParams(
            dimension_semantics=("parallel",)),
        cost_estimate=cost,
    )(*args)


# ---------------------------------------------------------------------------
# Parameters (deterministic init; shapes follow the PyTorch __init__)
# ---------------------------------------------------------------------------
def init_params(key, input_size, output_size, hidden_size=-1):
    def bn_init(k, n):
        k1, k2, k3, k4 = jax.random.split(k, 4)
        return {
            "gamma": 1.0 + 0.1 * jax.random.normal(k1, (n,), jnp.float32),
            "beta": 0.1 * jax.random.normal(k2, (n,), jnp.float32),
            "mean": 0.1 * jax.random.normal(k3, (n,), jnp.float32),
            "var": jax.random.uniform(k4, (n,), jnp.float32, 0.5, 1.5),
        }

    if hidden_size > 0:
        k = jax.random.split(key, 6)
        return {
            # Linear weights stored pre-transposed as (in, out).
            "w1": jax.random.normal(k[0], (input_size, hidden_size), jnp.float32)
                  * input_size ** -0.5,
            "b1": 0.1 * jax.random.normal(k[1], (hidden_size,), jnp.float32),
            "bn1": bn_init(k[2], hidden_size),          # gated by use_bn
            "w2": jax.random.normal(k[3], (hidden_size, output_size), jnp.float32)
                  * hidden_size ** -0.5,
            "b2": 0.1 * jax.random.normal(k[4], (output_size,), jnp.float32),
            "bn2": bn_init(k[5], output_size),          # always applied (per module)
        }
    k = jax.random.split(key, 3)
    return {
        "w1": jax.random.normal(k[0], (input_size, output_size), jnp.float32)
              * input_size ** -0.5,
        "b1": 0.1 * jax.random.normal(k[1], (output_size,), jnp.float32),
        "bn_out": bn_init(k[2], output_size),           # always applied (per module)
    }


# ---------------------------------------------------------------------------
# One-time preparation: fold BN into the Linears, pre-cast weights to bf16,
# pre-reshape biases.  After this, a forward pass is a single pallas_call.
# ---------------------------------------------------------------------------
def _fold_bn(w, b, bn, eps=1e-5):
    scale = bn["gamma"] / jnp.sqrt(bn["var"] + eps)
    return w * scale[None, :], (b - bn["mean"]) * scale + bn["beta"]


def _folded_weights(params, use_bn, eps=1e-5):
    if "w2" in params:
        w1, b1 = params["w1"], params["b1"]
        if use_bn:                                   # hidden BN only if use_bn
            w1, b1 = _fold_bn(w1, b1, params["bn1"], eps)
        w2, b2 = _fold_bn(params["w2"], params["b2"], params["bn2"], eps)
        return w1, b1, w2, b2
    # hidden_size <= 0 branch: output BN is unconditional in the PyTorch module
    w, b = _fold_bn(params["w1"], params["b1"], params["bn_out"], eps)
    return w, b, None, None


def prepare_embedding_net(params, use_bn=True, eps=1e-5,
                          compute_dtype=jnp.bfloat16):
    """Fold BN, cast weights to bf16, reshape biases — once, offline."""
    w1, b1, w2, b2 = _folded_weights(params, use_bn, eps)
    prepared = {
        "w1": jnp.asarray(w1, compute_dtype),
        "b1": jnp.asarray(b1, jnp.float32).reshape(1, -1),
    }
    if w2 is not None:
        prepared["w2"] = jnp.asarray(w2, compute_dtype)
        prepared["b2"] = jnp.asarray(b2, jnp.float32).reshape(1, -1)
    return prepared


def embedding_net_forward(prepared, x, *, tile_m=512, out_dtype=jnp.float32):
    # Eval mode: BN folded, Dropout = identity.  The only op launched per call
    # is the fused pallas_call.
    # TODO(synk): train-mode BatchNorm (batch statistics) and RNG Dropout not modeled.
    return fused_mlp(x, prepared["w1"], prepared["b1"],
                     prepared.get("w2"), prepared.get("b2"),
                     tile_m=tile_m, out_dtype=out_dtype)


# ---------------------------------------------------------------------------
# Pure-JAX references
# ---------------------------------------------------------------------------
def _eval_ref(params, x, use_bn=True, eps=1e-5):
    """Mirrors the PyTorch module in eval mode, full fp32."""
    def bn(z, p):
        return (z - p["mean"]) / jnp.sqrt(p["var"] + eps) * p["gamma"] + p["beta"]

    if "w2" in params:
        h = x @ params["w1"] + params["b1"]
        if use_bn:
            h = bn(h, params["bn1"])
        h = jnp.maximum(h, 0.0)
        y = h @ params["w2"] + params["b2"]
        y = bn(y, params["bn2"])
        return jnp.maximum(y, 0.0)
    y = x @ params["w1"] + params["b1"]
    y = bn(y, params["bn_out"])
    return jnp.maximum(y, 0.0)


def _bf16_mirror_ref(x, prepared):
    """Mirrors the kernel's exact bf16-in / fp32-accumulate arithmetic."""
    hp = jax.lax.Precision.HIGHEST
    f32 = lambda a: a.astype(jnp.float32)
    xb = f32(x.astype(jnp.bfloat16))
    h = jnp.dot(xb, f32(prepared["w1"]), precision=hp) + prepared["b1"]
    h = jnp.maximum(h, 0.0)
    if "w2" not in prepared:
        return h
    hb = f32(h.astype(jnp.bfloat16))
    y = jnp.dot(hb, f32(prepared["w2"]), precision=hp) + prepared["b2"]
    return jnp.maximum(y, 0.0)


# ---------------------------------------------------------------------------
if __name__ == "__main__":
    input_size, hidden_size, output_size = 32, 128, 128
    N = 1000   # not a multiple of 512 -> exercises edge-block masking; grid = 2

    key = jax.random.PRNGKey(0)
    kx, kp, kp1 = jax.random.split(key, 3)
    x = jax.random.normal(kx, (N, input_size), jnp.float32)

    fwd = jax.jit(embedding_net_forward, static_argnames=("tile_m", "out_dtype"))

    # --- hidden_size > 0, use_bn=True: full Linear-BN-ReLU-Drop x2 stack -----
    params = init_params(kp, input_size, output_size, hidden_size)
    prepared = prepare_embedding_net(params, use_bn=True)      # one-time prep
    out = fwd(prepared, x)
    jax.block_until_ready(out)
    assert out.shape == (N, output_size) and out.dtype == jnp.float32

    mirror = _bf16_mirror_ref(x, prepared)
    ref = _eval_ref(params, x, use_bn=True)
    assert jnp.allclose(out, mirror, atol=2e-3, rtol=2e-3), \
        float(jnp.max(jnp.abs(out - mirror)))
    assert jnp.allclose(out, ref, atol=5e-2, rtol=5e-2), \
        float(jnp.max(jnp.abs(out - ref)))

    # --- bf16-output serving path (halves the dominant HBM store stream) -----
    out_bf16 = fwd(prepared, x, out_dtype=jnp.bfloat16)
    jax.block_until_ready(out_bf16)
    assert out_bf16.dtype == jnp.bfloat16
    assert jnp.allclose(out_bf16.astype(jnp.float32), out, atol=1e-1, rtol=1e-1)

    # --- hidden_size > 0, use_bn=False: hidden BN skipped, output BN kept ----
    prepared_nobn = prepare_embedding_net(params, use_bn=False)
    out_nobn = fwd(prepared_nobn, x)
    jax.block_until_ready(out_nobn)
    ref_nobn = _eval_ref(params, x, use_bn=False)
    assert jnp.allclose(out_nobn, ref_nobn, atol=5e-2, rtol=5e-2), \
        float(jnp.max(jnp.abs(out_nobn - ref_nobn)))

    # --- hidden_size <= 0 branch: single Linear-BN-ReLU-Drop -----------------
    params1 = init_params(kp1, input_size, output_size, hidden_size=-1)
    prepared1 = prepare_embedding_net(params1, use_bn=True)
    out1 = fwd(prepared1, x)
    jax.block_until_ready(out1)
    ref1 = _eval_ref(params1, x, use_bn=True)
    assert out1.shape == (N, output_size)
    assert jnp.allclose(out1, ref1, atol=5e-2, rtol=5e-2), \
        float(jnp.max(jnp.abs(out1 - ref1)))

    print("KERNEL_OK")
</pallas_src>

<mosaic_0001>
module attributes {stable_mosaic.version = 11 : i64} {
  func.func @_mlp2_relu_kernel(%arg0: i32, %arg1: memref<512x32xf32, #tpu.memory_space<vmem>>, %arg2: memref<32x128xbf16, #tpu.memory_space<vmem>>, %arg3: memref<1x128xf32, #tpu.memory_space<vmem>>, %arg4: memref<128x128xbf16, #tpu.memory_space<vmem>>, %arg5: memref<1x128xf32, #tpu.memory_space<vmem>>, %arg6: memref<512x128xf32, #tpu.memory_space<vmem>>) attributes {dimension_semantics = [#tpu.dimension_semantics<parallel>], iteration_bounds = array<i64: 2>, scalar_prefetch = 0 : i64, scratch_operands = 0 : i64, tpu.core_type = #tpu.core_type<tc>, window_params = [{transform_indices = @transform_0, window_bounds = array<i64: 512, 32>}, {pipeline_mode = #tpu.pipeline_mode<synchronous>, transform_indices = @transform_1, window_bounds = array<i64: 32, 128>}, {pipeline_mode = #tpu.pipeline_mode<synchronous>, transform_indices = @transform_2, window_bounds = array<i64: 1, 128>}, {pipeline_mode = #tpu.pipeline_mode<synchronous>, transform_indices = @transform_3, window_bounds = array<i64: 128, 128>}, {pipeline_mode = #tpu.pipeline_mode<synchronous>, transform_indices = @transform_4, window_bounds = array<i64: 1, 128>}, {transform_indices = @transform_5, window_bounds = array<i64: 512, 128>}]} {
    %c0 = arith.constant 0 : index
    %c0_0 = arith.constant 0 : index
    %0 = vector.load %arg1[%c0, %c0_0] : memref<512x32xf32, #tpu.memory_space<vmem>>, vector<512x32xf32>
    %1 = arith.truncf %0 : vector<512x32xf32> to vector<512x32xbf16>
    %c0_1 = arith.constant 0 : index
    %c0_2 = arith.constant 0 : index
    %2 = vector.load %arg2[%c0_1, %c0_2] : memref<32x128xbf16, #tpu.memory_space<vmem>>, vector<32x128xbf16>
    %cst = arith.constant dense<0.000000e+00> : vector<512x128xf32>
    %3 = tpu.matmul %1, %2, %cst {dimension_numbers = #tpu.dot_dimension_numbers<[1], [0], [0], [1], [0, 0, 1, 1], [], []>} : vector<512x32xbf16>, vector<32x128xbf16>, vector<512x128xf32> -> vector<512x128xf32>
    %c0_3 = arith.constant 0 : index
    %c0_4 = arith.constant 0 : index
    %4 = vector.load %arg3[%c0_3, %c0_4] : memref<1x128xf32, #tpu.memory_space<vmem>>, vector<1x128xf32>
    %5 = vector.broadcast %4 : vector<1x128xf32> to vector<512x128xf32>
    %6 = arith.addf %3, %5 : vector<512x128xf32>
    %cst_5 = arith.constant 0.000000e+00 : f32
    %7 = vector.broadcast %cst_5 : f32 to vector<512x128xf32>
    %8 = arith.maximumf %6, %7 : vector<512x128xf32>
    %9 = arith.truncf %8 : vector<512x128xf32> to vector<512x128xbf16>
    %c0_6 = arith.constant 0 : index
    %c0_7 = arith.constant 0 : index
    %10 = vector.load %arg4[%c0_6, %c0_7] : memref<128x128xbf16, #tpu.memory_space<vmem>>, vector<128x128xbf16>
    %cst_8 = arith.constant dense<0.000000e+00> : vector<512x128xf32>
    %11 = tpu.matmul %9, %10, %cst_8 {dimension_numbers = #tpu.dot_dimension_numbers<[1], [0], [0], [1], [0, 0, 1, 1], [], []>} : vector<512x128xbf16>, vector<128x128xbf16>, vector<512x128xf32> -> vector<512x128xf32>
    %c0_9 = arith.constant 0 : index
    %c0_10 = arith.constant 0 : index
    %12 = vector.load %arg5[%c0_9, %c0_10] : memref<1x128xf32, #tpu.memory_space<vmem>>, vector<1x128xf32>
    %13 = vector.broadcast %12 : vector<1x128xf32> to vector<512x128xf32>
    %14 = arith.addf %11, %13 : vector<512x128xf32>
    %cst_11 = arith.constant 0.000000e+00 : f32
    %15 = vector.broadcast %cst_11 : f32 to vector<512x128xf32>
    %16 = arith.maximumf %14, %15 : vector<512x128xf32>
    %c0_12 = arith.constant 0 : index
    %c0_13 = arith.constant 0 : index
    %17 = vector.load %arg6[%c0_12, %c0_13] : memref<512x128xf32, #tpu.memory_space<vmem>>, vector<512x128xf32>
    tpu.vector_store %arg6[%c0_12, %c0_13], %16 {strides = array<i32>} : memref<512x128xf32, #tpu.memory_space<vmem>>, vector<512x128xf32>,
    return
  }
  func.func @transform_0(%arg0: i32) -> (i32, i32) {
    %c0_i32 = arith.constant 0 : i32
    %c0_i32_0 = arith.constant 0 : i32
    return %arg0, %c0_i32 : i32, i32
  }
  func.func @transform_1(%arg0: i32) -> (i32, i32) {
    %c0_i32 = arith.constant 0 : i32
    %c0_i32_0 = arith.constant 0 : i32
    %c0_i32_1 = arith.constant 0 : i32
    return %c0_i32, %c0_i32_0 : i32, i32
  }
  func.func @transform_2(%arg0: i32) -> (i32, i32) {
    %c0_i32 = arith.constant 0 : i32
    %c0_i32_0 = arith.constant 0 : i32
    %c0_i32_1 = arith.constant 0 : i32
    return %c0_i32, %c0_i32_0 : i32, i32
  }
  func.func @transform_3(%arg0: i32) -> (i32, i32) {
    %c0_i32 = arith.constant 0 : i32
    %c0_i32_0 = arith.constant 0 : i32
    %c0_i32_1 = arith.constant 0 : i32
    return %c0_i32, %c0_i32_0 : i32, i32
  }
  func.func @transform_4(%arg0: i32) -> (i32, i32) {
    %c0_i32 = arith.constant 0 : i32
    %c0_i32_0 = arith.constant 0 : i32
    %c0_i32_1 = arith.constant 0 : i32
    return %c0_i32, %c0_i32_0 : i32, i32
  }
  func.func @transform_5(%arg0: i32) -> (i32, i32) {
    %c0_i32 = arith.constant 0 : i32
    %c0_i32_0 = arith.constant 0 : i32
    return %arg0, %c0_i32 : i32, i32
  }
}

</mosaic_0001>

<bundles_post_ra>
// kernel: embedding_net_forward.1
= control target key start
LH: loop header
LB: loop body
LE: loop exit
PB: predicated region body
PF: predicated region fallthrough
CT: control target
= control target key end

     0   :  { %10 = vsyncpa [#allocation3], 0  ;;  %s2322_s0 = inlined_call_operand.vmem [shape: f32[1000,32], index: 0, kind: input, shape index: {}]   ;;  %s2323_s1 = inlined_call_operand.vmem [shape: bf16[32,128], index: 1, kind: input, shape index: {}]   ;;  %s2324_s2 = inlined_call_operand.vmem [shape: f32[1,128], index: 2, kind: input, shape index: {}]   ;;  %s2325_s3 = inlined_call_operand.vmem [shape: bf16[128,128], index: 3, kind: input, shape index: {}]   ;;  %s2326_s4 = inlined_call_operand.vmem [shape: f32[1,128], index: 4, kind: input, shape index: {}]   ;;  %s2327_s5 = inlined_call_operand.hbm [shape: f32[1000,128], index: 5, kind: output, shape index: {}]  }
   0x1   :  { %12 = vsyncpa [#allocation3 + $0x1], 0  ;;  %s1868_s18 = smov 0   ;;  %s1870_s19 = smov 0  }
   0x2   :  { %s1872_s20 = smov 0   ;;  %s1874_s21 = smov 0  }
   0x3 LB: > { %s1889_s22 = sadd.s32 4294967295, %s1833_s21   ;;  %s1422_s23 = sadd.s32 4294967294, %s1833_s21   ;;  %s1833_s21 = sphi %s1874_s21, %s2333_s21   ;;  %s1829_s20 = sphi %s1872_s20, %s2332_s20   ;;  %s1825_s19 = sphi %s1870_s19, %s2331_s19   ;;  %s1821_s18 = sphi %s1868_s18, %s2330_s18  }
   0x4   : > { %s1893_s24 = sadd.s32 1, %s1833_s21   ;;  %s135_s25 = sadd.s32 1, %s1829_s20 }
   0x5   : > { %s132_s26 = ssub.s32 %s1833_s21, %s1893_s24  ;;  %p145_p0 = scmp.ne.s32.totalorder %s1829_s20, %s1825_s19 }
   0x6   : > { %p133_p1 = scmp.eq.s32.totalorder %s132_s26, 0  ;;  %p146_p2 = scmp.eq.s32.totalorder %s1889_s22, 1 }
   0x7   : > { %p151_p3 = scmp.ne.s32.totalorder %s1825_s19, %s1821_s18  ;;  %p152_p4 = scmp.eq.s32.totalorder %s1422_s23, 1 }
   0x8   : > { %s1904_s27 = scalar_select %p133_p1, %s1829_s20, %s135_s25  }
   0x9   : > { %p1906_p5 = por %p146_p2, %p145_p0  ;;  %p1910_p6 = por %p152_p4, %p151_p3 }
   0xa   : > { %p1425_p7 = scmp.ge.s32.totalorder %s1833_s21, 1  ;;  %p199_p8 = scmp.lt.s32.totalorder %s1833_s21, 3 }
   0xc   : > { %p200_p9 = pnand %p1425_p7, %p199_p8 }
   0xd   : > { %v1761_v0 = vld [vmem:[%s2323_s1] sm:$0xff] (!%p200_p9)   ;;  %s1920_s7 = sshll.u32 (!%p200_p9), %s1889_s22, 6  ;;  %v1762_v1 = vld [vmem:[%s2323_s1 + $0x8] sm:$0xff] (!%p200_p9)   ;;  %vm370_vm0 = vcmask (!%p200_p9), 261120   ;;  %v1765_v13 = vld [vmem:[%s2325_s3 + $0x10] sm:$0xff] (!%p200_p9)  }
   0xe   : > { %203 = sbr.rel (%p200_p9) target bundleno = 619 (0x26b), region = 40  ;;  %p236_p10 = scmp.lt.s32.totalorder (!%p200_p9), %s1920_s7, 124  ;;  %1557 = vmatprep.subr.bf16.mxu0 (!%p200_p9), %v1761_v0  ;;  %v1763_v2 = vld [vmem:[%s2325_s3] sm:$0xff] (!%p200_p9)   ;;  %v1764_v3 = vld [vmem:[%s2325_s3 + $0x8] sm:$0xff] (!%p200_p9)   ;;  %v1766_v18 = vld [vmem:[%s2325_s3 + $0x18] sm:$0xff] (!%p200_p9)  }
   0xf   : > { %1558 = vmatpush3.bf16.msra.mxu0 (!%p200_p9), %v1761_v0  ;;  %1705 = vmatprep.subr.bf16.mxu1 (!%p200_p9), %v1763_v2  ;;  %v1767_v31 = vld [vmem:[%s2325_s3 + $0x20] sm:$0xff] (!%p200_p9)   ;;  %v1768_v32 = vld [vmem:[%s2325_s3 + $0x28] sm:$0xff] (!%p200_p9)  }
  0x10   : > { %1559 = vmatprep.subr.bf16.mxu0 (!%p200_p9), %v1762_v1  ;;  %1713 = vmatpush3.bf16.msra.mxu1 (!%p200_p9), %v1763_v2 }
  0x11   : > { %1706 = vmatprep.subr.bf16.mxu1 (!%p200_p9), %v1764_v3 }
  0x13   : > { %1560 = vmatpush3.bf16.msra.mxu0 (!%p200_p9), %v1762_v1 }
  0x14   : > { %1625 = vmatprep.subr.bf16.mxu0 (!%p200_p9), %v1763_v2  ;;  %1714 = vmatpush3.bf16.msra.mxu1 (!%p200_p9), %v1764_v3 }
  0x15   : > { %s237_s10 = scalar_select %p236_p10, %s1920_s7, 124  ;;  %1707 = vmatprep.subr.bf16.mxu1 %v1765_v13 }
  0x16   : > { %s1349_s9 = ssub.s32 (%p1906_p5), 125, %s1920_s7 }
  0x17   : > { %s1428_s13 = sshll.u32 %s237_s10, 3  ;;  %p1350_p11 = scmp.lt.s32.totalorder (%p1906_p5), %s1349_s9, 64 }
  0x18   : > { %s1936_s23 = scalar_lea.vmem %s2322_s0, %s1428_s13  ;;  %1715 = vmatpush3.bf16.msra.mxu1 %v1765_v13 }
  0x19   : > { %v251_v4 = vld [vmem:[%s1936_s23] sm:$0xff]  ;;  %v252_v5 = vld [vmem:[%s1936_s23 + $0x8] sm:$0xff]  ;;  %v253_v6 = vld [vmem:[%s1936_s23 + $0x10] sm:$0xff]  ;;  %1708 = vmatprep.subr.bf16.mxu1 %v1766_v18 }
  0x1a   : > { %v315_v7 = vpack.c.bf16 %v252_v5, %v251_v4  ;;  %v254_v8 = vld [vmem:[%s1936_s23 + $0x18] sm:$0xff]  ;;  %v255_v9 = vld [vmem:[%s1936_s23 + $0x20] sm:$0xff]  ;;  %v256_v10 = vld [vmem:[%s1936_s23 + $0x28] sm:$0xff] }
  0x1b   : > { %v316_v11 = vpack.c.bf16 %v254_v8, %v253_v6  ;;  %v317_v12 = vpack.c.bf16 %v256_v10, %v255_v9  ;;  %v257_v14 = vld [vmem:[%s1936_s23 + $0x30] sm:$0xff]  ;;  %v258_v15 = vld [vmem:[%s1936_s23 + $0x38] sm:$0xff]  ;;  %v259_v16 = vld [vmem:[%s1936_s23 + $0x40] sm:$0xff] }
  0x1c   : > { %1561 = vmatprep.mubr.msk.bf16.mxu0 %vm370_vm0, %v315_v7  ;;  %v260_v17 = vld [vmem:[%s1936_s23 + $0x48] sm:$0xff]  ;;  %v318_v19 = vpack.c.bf16 %v258_v15, %v257_v14  ;;  %1716 = vmatpush3.bf16.msra.mxu1 %v1766_v18  ;;  %v261_v21 = vld [vmem:[%s1936_s23 + $0x50] sm:$0xff]  ;;  %v262_v22 = vld [vmem:[%s1936_s23 + $0x58] sm:$0xff] }
  0x1d   : > { %1562 = vmatmul.mubr.msk.bf16.vlgmr.msra.gmra.mrb[0].mxu0 %vm370_vm0, %v316_v11  ;;  %v319_v20 = vpack.c.bf16 %v260_v17, %v259_v16  ;;  %v263_v23 = vld [vmem:[%s1936_s23 + $0x60] sm:$0xff]  ;;  %v264_v24 = vld [vmem:[%s1936_s23 + $0x68] sm:$0xff]  ;;  %v320_v25 = vpack.c.bf16 %v262_v22, %v261_v21  ;;  %v265_v27 = vld [vmem:[%s1936_s23 + $0x70] sm:$0xff]  ;;  %1709 = vmatprep.subr.bf16.mxu1 %v1767_v31 }
  0x1e   : > { %1565 = vmatprep.mubr.msk.bf16.mxu0 %vm370_vm0, %v317_v12  ;;  %1626 = vmatpush3.bf16.msra.mxu0 %v1763_v2  ;;  %v321_v26 = vpack.c.bf16 %v264_v24, %v263_v23  ;;  %v266_v28 = vld [vmem:[%s1936_s23 + $0x78] sm:$0xff]  ;;  %v267_v29 = vld [vmem:[%s1936_s23 + $0x80] sm:$0xff]  ;;  %v268_v30 = vld [vmem:[%s1936_s23 + $0x88] sm:$0xff] }
  0x1f   : > { %1627 = vmatprep.subr.bf16.mxu0 %v1764_v3  ;;  %v322_v33 = vpack.c.bf16 %v266_v28, %v265_v27  ;;  %v323_v34 = vpack.c.bf16 %v268_v30, %v267_v29  ;;  %v269_v35 = vld [vmem:[%s1936_s23 + $0x90] sm:$0xff]  ;;  %v270_v36 = vld [vmem:[%s1936_s23 + $0x98] sm:$0xff]  ;;  %v271_v37 = vld [vmem:[%s1936_s23 + $0xa0] sm:$0xff] }
  0x20   : > { %1717 = vmatpush3.bf16.msra.mxu1 %v1767_v31  ;;  %v272_v38 = vld [vmem:[%s1936_s23 + $0xa8] sm:$0xff]  ;;  %v324_v39 = vpack.c.bf16 %v270_v36, %v269_v35  ;;  %v273_v41 = vld [vmem:[%s1936_s23 + $0xb0] sm:$0xff]  ;;  %v274_v42 = vld [vmem:[%s1936_s23 + $0xb8] sm:$0xff] }
  0x21   : > { %1710 = vmatprep.subr.bf16.mxu1 %v1768_v32  ;;  %v325_v40 = vpack.c.bf16 %v272_v38, %v271_v37  ;;  %v275_v43 = vld [vmem:[%s1936_s23 + $0xc0] sm:$0xff]  ;;  %v276_v44 = vld [vmem:[%s1936_s23 + $0xc8] sm:$0xff]  ;;  %v326_v45 = vpack.c.bf16 %v274_v42, %v273_v41  ;;  %v277_v47 = vld [vmem:[%s1936_s23 + $0xd0] sm:$0xff] }
  0x22   : > { %1628 = vmatpush3.bf16.msra.mxu0 %v1764_v3  ;;  %v327_v46 = vpack.c.bf16 %v276_v44, %v275_v43  ;;  %v278_v48 = vld [vmem:[%s1936_s23 + $0xd8] sm:$0xff]  ;;  %v279_v49 = vld [vmem:[%s1936_s23 + $0xe0] sm:$0xff]  ;;  %v280_v50 = vld [vmem:[%s1936_s23 + $0xe8] sm:$0xff] }
  0x23   : > { %1629 = vmatprep.subr.bf16.mxu0 %v1765_v13  ;;  %v328_v51 = vpack.c.bf16 %v278_v48, %v277_v47  ;;  %v329_v52 = vpack.c.bf16 %v280_v50, %v279_v49  ;;  %v281_v53 = vld [vmem:[%s1936_s23 + $0xf0] sm:$0xff]  ;;  %v282_v54 = vld [vmem:[%s1936_s23 + $0xf8] sm:$0xff]  ;;  %v283_v55 = vld [vmem:[%s1936_s23 + $0x100] sm:$0xff] }
  0x24   : > { %1718 = vmatpush3.bf16.msra.mxu1 %v1768_v32  ;;  %v284_v56 = vld [vmem:[%s1936_s23 + $0x108] sm:$0xff]  ;;  %v330_v57 = vpack.c.bf16 %v282_v54, %v281_v53  ;;  %v285_v59 = vld [vmem:[%s1936_s23 + $0x110] sm:$0xff]  ;;  %v286_v60 = vld [vmem:[%s1936_s23 + $0x118] sm:$0xff] }
  0x25   : > { %1566 = vmatmul.mubr.msk.bf16.gmra.mrb[4].mxu0 %vm370_vm0, %v318_v19  ;;  %v331_v58 = vpack.c.bf16 %v284_v56, %v283_v55  ;;  %v287_v61 = vld [vmem:[%s1936_s23 + $0x120] sm:$0xff]  ;;  %v288_v62 = vld [vmem:[%s1936_s23 + $0x128] sm:$0xff]  ;;  %v332_v63 = vpack.c.bf16 %v286_v60, %v285_v59  ;;  %v289_v1 = vld [vmem:[%s1936_s23 + $0x130] sm:$0xff] }
  0x26   : > { %1569 = vmatprep.mubr.msk.bf16.mxu0 %vm370_vm0, %v319_v20  ;;  %1630 = vmatpush3.bf16.msra.mxu0 %v1765_v13  ;;  %v333_v0 = vpack.c.bf16 %v288_v62, %v287_v61  ;;  %v290_v2 = vld [vmem:[%s1936_s23 + $0x138] sm:$0xff]  ;;  %v291_v3 = vld [vmem:[%s1936_s23 + $0x140] sm:$0xff]  ;;  %v292_v4 = vld [vmem:[%s1936_s23 + $0x148] sm:$0xff] }
  0x27   : > { %1631 = vmatprep.subr.bf16.mxu0 %v1766_v18  ;;  %v334_v5 = vpack.c.bf16 %v290_v2, %v289_v1  ;;  %v335_v6 = vpack.c.bf16 %v292_v4, %v291_v3  ;;  %v293_v7 = vld [vmem:[%s1936_s23 + $0x150] sm:$0xff]  ;;  %v294_v8 = vld [vmem:[%s1936_s23 + $0x158] sm:$0xff]  ;;  %v295_v9 = vld [vmem:[%s1936_s23 + $0x160] sm:$0xff] }
  0x28   : > { %v296_v10 = vld [vmem:[%s1936_s23 + $0x168] sm:$0xff]  ;;  %v336_v11 = vpack.c.bf16 %v294_v8, %v293_v7  ;;  %v297_v13 = vld [vmem:[%s1936_s23 + $0x170] sm:$0xff]  ;;  %v298_v14 = vld [vmem:[%s1936_s23 + $0x178] sm:$0xff] }
  0x29   : > { %v337_v12 = vpack.c.bf16 %v296_v10, %v295_v9  ;;  %v299_v15 = vld [vmem:[%s1936_s23 + $0x180] sm:$0xff]  ;;  %v300_v16 = vld [vmem:[%s1936_s23 + $0x188] sm:$0xff]  ;;  %v338_v17 = vpack.c.bf16 %v298_v14, %v297_v13  ;;  %v1770_v20 = vld [vmem:[%s2325_s3 + $0x38] sm:$0xff]  }
  0x2a   : > { %1632 = vmatpush3.bf16.msra.mxu0 %v1766_v18  ;;  %v1769_v18 = vld [vmem:[%s2325_s3 + $0x30] sm:$0xff]   ;;  %v339_v19 = vpack.c.bf16 %v300_v16, %v299_v15  ;;  %v302_v22 = vld [vmem:[%s1936_s23 + $0x198] sm:$0xff]  ;;  %v303_v23 = vld [vmem:[%s1936_s23 + $0x1a0] sm:$0xff] }
  0x2b   : > { %1633 = vmatprep.subr.bf16.mxu0 %v1767_v31  ;;  %1711 = vmatprep.subr.bf16.mxu1 %v1769_v18  ;;  %v301_v21 = vld [vmem:[%s1936_s23 + $0x190] sm:$0xff]  ;;  %v304_v24 = vld [vmem:[%s1936_s23 + $0x1a8] sm:$0xff]  ;;  %v306_v28 = vld [vmem:[%s1936_s23 + $0x1b8] sm:$0xff] }
  0x2c   : > { %1719 = vmatpush3.bf16.msra.mxu1 %v1769_v18  ;;  %v305_v27 = vld [vmem:[%s1936_s23 + $0x1b0] sm:$0xff]  ;;  %v307_v29 = vld [vmem:[%s1936_s23 + $0x1c0] sm:$0xff]  ;;  %v308_v30 = vld [vmem:[%s1936_s23 + $0x1c8] sm:$0xff] }
  0x2d   : > { %1570 = vmatmul.mubr.msk.bf16.gmra.mrb[8].mxu0 %vm370_vm0, %v320_v25  ;;  %1712 = vmatprep.subr.bf16.mxu1 %v1770_v20  ;;  %v340_v25 = vpack.c.bf16 %v302_v22, %v301_v21  ;;  %v311_v35 = vld [vmem:[%s1936_s23 + $0x1e0] sm:$0xff]  ;;  %v312_v36 = vld [vmem:[%s1936_s23 + $0x1e8] sm:$0xff] }
  0x2e   : > { %1573 = vmatprep.mubr.msk.bf16.mxu0 %vm370_vm0, %v321_v26  ;;  %1634 = vmatpush3.bf16.msra.mxu0 %v1767_v31  ;;  %v341_v26 = vpack.c.bf16 %v304_v24, %v303_v23  ;;  %v342_v31 = vpack.c.bf16 %v306_v28, %v305_v27  ;;  %v345_v38 = vpack.c.bf16 %v312_v36, %v311_v35  ;;  %v2055_v42 = vld [vmem:[%s2324_s2] ss:$0 sm:$0xff] }
  0x2f   : > { %1635 = vmatprep.subr.bf16.mxu0 %v1768_v32 }
  0x30   : > { %1720 = vmatpush3.bf16.msra.mxu1 %v1770_v20 }
  0x32   : > { %1636 = vmatpush3.bf16.msra.mxu0 %v1768_v32  ;;  %v343_v32 = vpack.c.bf16 %v308_v30, %v307_v29 }
  0x33   : > { %1637 = vmatprep.subr.bf16.mxu0 %v1769_v18 }
  0x35   : > { %1574 = vmatmul.mubr.msk.bf16.gmra.mrb[12].mxu0 %vm370_vm0, %v322_v33  ;;  %v309_v33 = vld [vmem:[%s1936_s23 + $0x1d0] sm:$0xff] }
  0x36   : > { %1577 = vmatprep.mubr.msk.bf16.mxu0 %vm370_vm0, %v323_v34  ;;  %1638 = vmatpush3.bf16.msra.mxu0 %v1769_v18  ;;  %v310_v34 = vld [vmem:[%s1936_s23 + $0x1d8] sm:$0xff] }
  0x37   : > { %1639 = vmatprep.subr.bf16.mxu0 %v1770_v20  ;;  %v344_v37 = vpack.c.bf16 %v310_v34, %v309_v33 }
  0x3a   : > { %1640 = vmatpush3.bf16.msra.mxu0 %v1770_v20 }
  0x3d   : > { %1578 = vmatmul.mubr.msk.bf16.gmra.mrb[16].mxu0 %vm370_vm0, %v324_v39  ;;  %v313_v39 = vld [vmem:[%s1936_s23 + $0x1f0] sm:$0xff] }
  0x3e   : > { %1581 = vmatprep.mubr.msk.bf16.mxu0 %vm370_vm0, %v325_v40  ;;  %v314_v40 = vld [vmem:[%s1936_s23 + $0x1f8] sm:$0xff]  ;;  %s228_s23 = sand.u32 1, %s1825_s19  }
  0x3f   : > { %v346_v41 = vpack.c.bf16 %v314_v40, %v313_v39  ;;  %s1426_s30 = sshll.u32 %s228_s23, 9  ;;  %s2261_s8 = scalar_lea.sflag [#allocation3], %s228_s23 }
  0x40   : > { %s2133_s6 = scalar_lea.vmem [#allocation2], %s1426_s30 }
  0x45   : > { %1582 = vmatmul.mubr.msk.bf16.gmra.mrb[20].mxu0 %vm370_vm0, %v326_v45 }
  0x46   : > { %1585 = vmatprep.mubr.msk.bf16.mxu0 %vm370_vm0, %v327_v46 }
  0x4d   : > { %1586 = vmatmul.mubr.msk.bf16.gmra.mrb[24].mxu0 %vm370_vm0, %v328_v51 }
  0x4e   : > { %1589 = vmatprep.mubr.msk.bf16.mxu0 %vm370_vm0, %v329_v52 }
  0x55   : > { %1590 = vmatmul.mubr.msk.bf16.gmra.mrb[28].mxu0 %vm370_vm0, %v330_v57 }
  0x56   : > { %1593 = vmatprep.mubr.msk.bf16.mxu0 %vm370_vm0, %v331_v58 }
  0x5d   : > { %1594 = vmatmul.mubr.msk.bf16.gmra.mrb[32].mxu0 %vm370_vm0, %v332_v63 }
  0x5e   : > { %1597 = vmatprep.mubr.msk.bf16.mxu0 %vm370_vm0, %v333_v0 }
  0x65   : > { %1598 = vmatmul.mubr.msk.bf16.gmra.mrb[36].mxu0 %vm370_vm0, %v334_v5 }
  0x66   : > { %1601 = vmatprep.mubr.msk.bf16.mxu0 %vm370_vm0, %v335_v6 }
  0x6d   : > { %1602 = vmatmul.mubr.msk.bf16.gmra.mrb[40].mxu0 %vm370_vm0, %v336_v11 }
  0x6e   : > { %1605 = vmatprep.mubr.msk.bf16.mxu0 %vm370_vm0, %v337_v12 }
  0x75   : > { %1606 = vmatmul.mubr.msk.bf16.gmra.mrb[44].mxu0 %vm370_vm0, %v338_v17 }
  0x76   : > { %1609 = vmatprep.mubr.msk.bf16.mxu0 %vm370_vm0, %v339_v19 }
  0x7d   : > { %1610 = vmatmul.mubr.msk.bf16.gmra.mrb[48].mxu0 %vm370_vm0, %v340_v25 }
  0x7e   : > { %1613 = vmatprep.mubr.msk.bf16.mxu0 %vm370_vm0, %v341_v26 }
  0x85   : > { %1614 = vmatmul.mubr.msk.bf16.gmra.mrb[52].mxu0 %vm370_vm0, %v342_v31 }
  0x86   : > { %1617 = vmatprep.mubr.msk.bf16.mxu0 %vm370_vm0, %v343_v32 }
  0x8d   : > { %1618 = vmatmul.mubr.msk.bf16.gmra.mrb[56].mxu0 %vm370_vm0, %v344_v37 }
  0x8e   : > { %1621 = vmatprep.mubr.msk.bf16.mxu0 %vm370_vm0, %v345_v38 }
  0x95   : > { %1622 = vmatmul.mubr.msk.bf16.gmra.mrb[60].mxu0 %vm370_vm0, %v346_v41 }
  0xf0   : > { %v1563_v43 = vpop.f32.mrb[0].mxu0 }
  0xf1   : > { %v510_v44 = vadd.f32 %v1563_v43, %v2055_v42  ;;  %v501_v45 = vpop.f32.mrb[1].mxu0 }
  0xf2   : > { %v502_v46 = vadd.f32 %v2055_v42, %v501_v45  ;;  %v1564_v47 = vpop.f32.mrb[2].mxu0 }
  0xf3   : > { %v513_v48 = vadd.f32 %v1564_v47, %v2055_v42  ;;  %v504_v49 = vpop.f32.mrb[3].mxu0  ;;  %v758_v51 = vmax.f32 %v510_v44, 0.0 }
  0xf4   : > { %v505_v50 = vadd.f32 %v2055_v42, %v504_v49  ;;  %v756_v53 = vmax.f32 %v502_v46, 0.0 }
  0xf5   : > { %v759_v52 = vmax.f32 %v513_v48, 0.0 }
  0xf6   : > { %v757_v54 = vmax.f32 %v505_v50, 0.0 }
  0xf7   : > { %v821_v55 = vpack.c.bf16 %v759_v52, %v758_v51 }
  0xf8   : > { %v820_v56 = vpack.c.bf16 %v757_v54, %v756_v53  ;;  %v1567_v57 = vpop.f32.mrb[4].mxu0 }
  0xf9   : > { %v526_v58 = vadd.f32 %v1567_v57, %v2055_v42  ;;  %v517_v59 = vpop.f32.mrb[5].mxu0 }
  0xfa   : > { %v518_v60 = vadd.f32 %v2055_v42, %v517_v59  ;;  %v1568_v61 = vpop.f32.mrb[6].mxu0  ;;  %1641 = vmatprep.mubr.bf16.mxu0 %v820_v56 }
  0xfb   : > { %v529_v62 = vadd.f32 %v1568_v61, %v2055_v42  ;;  %v520_v63 = vpop.f32.mrb[7].mxu0  ;;  %1642 = vmatmul.mubr.bf16.vlgmr.msra.gmra.mrb[64].mxu0 %v821_v55  ;;  %v762_v1 = vmax.f32 %v526_v58, 0.0 }
  0xfc   : > { %v521_v0 = vadd.f32 %v2055_v42, %v520_v63  ;;  %v760_v3 = vmax.f32 %v518_v60, 0.0 }
  0xfd   : > { %v763_v2 = vmax.f32 %v529_v62, 0.0 }
  0xfe   : > { %v761_v4 = vmax.f32 %v521_v0, 0.0 }
  0xff   : > { %v823_v5 = vpack.c.bf16 %v763_v2, %v762_v1 }
 0x100   : > { %v1571_v6 = vpop.f32.mrb[8].mxu0  ;;  %v822_v7 = vpack.c.bf16 %v761_v4, %v760_v3 }
 0x101   : > { %v542_v8 = vadd.f32 %v1571_v6, %v2055_v42  ;;  %v533_v9 = vpop.f32.mrb[9].mxu0 }
 0x102   : > { %v534_v10 = vadd.f32 %v2055_v42, %v533_v9  ;;  %v1572_v11 = vpop.f32.mrb[10].mxu0  ;;  %1645 = vmatprep.mubr.bf16.mxu1 %v822_v7 }
 0x103   : > { %v545_v12 = vadd.f32 %v1572_v11, %v2055_v42  ;;  %v536_v13 = vpop.f32.mrb[11].mxu0  ;;  %1646 = vmatmul.mubr.bf16.vlgmr.msra.gmra.mrb[0].mxu1 %v823_v5  ;;  %v766_v15 = vmax.f32 %v542_v8, 0.0 }
 0x104   : > { %v537_v14 = vadd.f32 %v2055_v42, %v536_v13  ;;  %v764_v17 = vmax.f32 %v534_v10, 0.0 }
 0x105   : > { %v767_v16 = vmax.f32 %v545_v12, 0.0 }
 0x106   : > { %v765_v18 = vmax.f32 %v537_v14, 0.0 }
 0x107   : > { %v825_v19 = vpack.c.bf16 %v767_v16, %v766_v15 }
 0x108   : > { %v824_v20 = vpack.c.bf16 %v765_v18, %v764_v17  ;;  %v1575_v21 = vpop.f32.mrb[12].mxu0 }
 0x109   : > { %v558_v22 = vadd.f32 %v1575_v21, %v2055_v42  ;;  %v549_v23 = vpop.f32.mrb[13].mxu0 }
 0x10a   : > { %v550_v24 = vadd.f32 %v2055_v42, %v549_v23  ;;  %v1576_v25 = vpop.f32.mrb[14].mxu0  ;;  %1649 = vmatprep.mubr.bf16.mxu1 %v824_v20 }
 0x10b   : > { %v561_v26 = vadd.f32 %v1576_v25, %v2055_v42  ;;  %v552_v27 = vpop.f32.mrb[15].mxu0  ;;  %1650 = vmatmul.mubr.bf16.gmra.mrb[4].mxu1 %v825_v19  ;;  %v770_v29 = vmax.f32 %v558_v22, 0.0 }
 0x10c   : > { %v553_v28 = vadd.f32 %v2055_v42, %v552_v27  ;;  %v768_v31 = vmax.f32 %v550_v24, 0.0 }
 0x10d   : > { %v771_v30 = vmax.f32 %v561_v26, 0.0 }
 0x10e   : > { %v769_v32 = vmax.f32 %v553_v28, 0.0 }
 0x10f   : > { %v827_v33 = vpack.c.bf16 %v771_v30, %v770_v29 }
 0x110   : > { %v826_v34 = vpack.c.bf16 %v769_v32, %v768_v31  ;;  %v1579_v35 = vpop.f32.mrb[16].mxu0 }
 0x111   : > { %v574_v36 = vadd.f32 %v1579_v35, %v2055_v42  ;;  %v565_v37 = vpop.f32.mrb[17].mxu0 }
 0x112   : > { %v566_v38 = vadd.f32 %v2055_v42, %v565_v37  ;;  %v1580_v39 = vpop.f32.mrb[18].mxu0  ;;  %1653 = vmatprep.mubr.bf16.mxu1 %v826_v34 }
 0x113   : > { %v577_v40 = vadd.f32 %v1580_v39, %v2055_v42  ;;  %v568_v41 = vpop.f32.mrb[19].mxu0  ;;  %1654 = vmatmul.mubr.bf16.gmra.mrb[8].mxu1 %v827_v33  ;;  %v774_v44 = vmax.f32 %v574_v36, 0.0 }
 0x114   : > { %v569_v43 = vadd.f32 %v2055_v42, %v568_v41  ;;  %v772_v46 = vmax.f32 %v566_v38, 0.0 }
 0x115   : > { %v775_v45 = vmax.f32 %v577_v40, 0.0 }
 0x116   : > { %v773_v47 = vmax.f32 %v569_v43, 0.0 }
 0x117   : > { %v829_v48 = vpack.c.bf16 %v775_v45, %v774_v44 }
 0x118   : > { %v828_v49 = vpack.c.bf16 %v773_v47, %v772_v46  ;;  %v1583_v50 = vpop.f32.mrb[20].mxu0 }
 0x119   : > { %v590_v51 = vadd.f32 %v1583_v50, %v2055_v42  ;;  %v581_v52 = vpop.f32.mrb[21].mxu0 }
 0x11a   : > { %v582_v53 = vadd.f32 %v2055_v42, %v581_v52  ;;  %v1584_v54 = vpop.f32.mrb[22].mxu0  ;;  %1657 = vmatprep.mubr.bf16.mxu1 %v828_v49 }
 0x11b   : > { %v593_v55 = vadd.f32 %v1584_v54, %v2055_v42  ;;  %v584_v56 = vpop.f32.mrb[23].mxu0  ;;  %1658 = vmatmul.mubr.bf16.gmra.mrb[12].mxu1 %v829_v48  ;;  %v778_v58 = vmax.f32 %v590_v51, 0.0 }
 0x11c   : > { %v585_v57 = vadd.f32 %v2055_v42, %v584_v56  ;;  %v776_v60 = vmax.f32 %v582_v53, 0.0 }
 0x11d   : > { %v779_v59 = vmax.f32 %v593_v55, 0.0 }
 0x11e   : > { %v777_v61 = vmax.f32 %v585_v57, 0.0 }
 0x11f   : > { %v831_v62 = vpack.c.bf16 %v779_v59, %v778_v58 }
 0x120   : > { %v830_v63 = vpack.c.bf16 %v777_v61, %v776_v60  ;;  %v1587_v0 = vpop.f32.mrb[24].mxu0 }
 0x121   : > { %v606_v1 = vadd.f32 %v1587_v0, %v2055_v42  ;;  %v597_v2 = vpop.f32.mrb[25].mxu0 }
 0x122   : > { %v598_v3 = vadd.f32 %v2055_v42, %v597_v2  ;;  %v1588_v4 = vpop.f32.mrb[26].mxu0  ;;  %1661 = vmatprep.mubr.bf16.mxu1 %v830_v63 }
 0x123   : > { %v609_v5 = vadd.f32 %v1588_v4, %v2055_v42  ;;  %v600_v6 = vpop.f32.mrb[27].mxu0  ;;  %1662 = vmatmul.mubr.bf16.gmra.mrb[16].mxu1 %v831_v62  ;;  %v782_v8 = vmax.f32 %v606_v1, 0.0 }
 0x124   : > { %v601_v7 = vadd.f32 %v2055_v42, %v600_v6  ;;  %v780_v10 = vmax.f32 %v598_v3, 0.0 }
 0x125   : > { %v783_v9 = vmax.f32 %v609_v5, 0.0 }
 0x126   : > { %v781_v11 = vmax.f32 %v601_v7, 0.0 }
 0x127   : > { %v833_v12 = vpack.c.bf16 %v783_v9, %v782_v8 }
 0x128   : > { %v832_v13 = vpack.c.bf16 %v781_v11, %v780_v10  ;;  %v1591_v14 = vpop.f32.mrb[28].mxu0 }
 0x129   : > { %v622_v15 = vadd.f32 %v1591_v14, %v2055_v42  ;;  %v613_v16 = vpop.f32.mrb[29].mxu0 }
 0x12a   : > { %v614_v17 = vadd.f32 %v2055_v42, %v613_v16  ;;  %v1592_v18 = vpop.f32.mrb[30].mxu0  ;;  %1665 = vmatprep.mubr.bf16.mxu1 %v832_v13 }
 0x12b   : > { %v625_v19 = vadd.f32 %v1592_v18, %v2055_v42  ;;  %v616_v20 = vpop.f32.mrb[31].mxu0  ;;  %1666 = vmatmul.mubr.bf16.gmra.mrb[20].mxu1 %v833_v12  ;;  %v786_v22 = vmax.f32 %v622_v15, 0.0 }
 0x12c   : > { %v617_v21 = vadd.f32 %v2055_v42, %v616_v20  ;;  %v784_v24 = vmax.f32 %v614_v17, 0.0 }
 0x12d   : > { %v787_v23 = vmax.f32 %v625_v19, 0.0 }
 0x12e   : > { %v785_v25 = vmax.f32 %v617_v21, 0.0 }
 0x12f   : > { %v835_v26 = vpack.c.bf16 %v787_v23, %v786_v22 }
 0x130   : > { %v834_v27 = vpack.c.bf16 %v785_v25, %v784_v24  ;;  %v1595_v28 = vpop.f32.mrb[32].mxu0 }
 0x131   : > { %v638_v29 = vadd.f32 %v1595_v28, %v2055_v42  ;;  %v629_v30 = vpop.f32.mrb[33].mxu0 }
 0x132   : > { %v630_v31 = vadd.f32 %v2055_v42, %v629_v30  ;;  %v1596_v32 = vpop.f32.mrb[34].mxu0  ;;  %1669 = vmatprep.mubr.bf16.mxu1 %v834_v27 }
 0x133   : > { %v641_v33 = vadd.f32 %v1596_v32, %v2055_v42  ;;  %v632_v34 = vpop.f32.mrb[35].mxu0  ;;  %1670 = vmatmul.mubr.bf16.gmra.mrb[24].mxu1 %v835_v26  ;;  %v790_v36 = vmax.f32 %v638_v29, 0.0 }
 0x134   : > { %v633_v35 = vadd.f32 %v2055_v42, %v632_v34  ;;  %v788_v38 = vmax.f32 %v630_v31, 0.0 }
 0x135   : > { %v791_v37 = vmax.f32 %v641_v33, 0.0 }
 0x136   : > { %v789_v39 = vmax.f32 %v633_v35, 0.0 }
 0x137   : > { %v837_v40 = vpack.c.bf16 %v791_v37, %v790_v36 }
 0x138   : > { %v836_v41 = vpack.c.bf16 %v789_v39, %v788_v38  ;;  %v1599_v43 = vpop.f32.mrb[36].mxu0 }
 0x139   : > { %v654_v44 = vadd.f32 %v1599_v43, %v2055_v42  ;;  %v645_v45 = vpop.f32.mrb[37].mxu0 }
 0x13a   : > { %v646_v46 = vadd.f32 %v2055_v42, %v645_v45  ;;  %v1600_v47 = vpop.f32.mrb[38].mxu0  ;;  %1673 = vmatprep.mubr.bf16.mxu1 %v836_v41 }
 0x13b   : > { %v657_v48 = vadd.f32 %v1600_v47, %v2055_v42  ;;  %v648_v49 = vpop.f32.mrb[39].mxu0  ;;  %1674 = vmatmul.mubr.bf16.gmra.mrb[28].mxu1 %v837_v40  ;;  %v794_v51 = vmax.f32 %v654_v44, 0.0 }
 0x13c   : > { %v649_v50 = vadd.f32 %v2055_v42, %v648_v49  ;;  %v792_v53 = vmax.f32 %v646_v46, 0.0 }
 0x13d   : > { %v795_v52 = vmax.f32 %v657_v48, 0.0 }
 0x13e   : > { %v793_v54 = vmax.f32 %v649_v50, 0.0 }
 0x13f   : > { %v839_v55 = vpack.c.bf16 %v795_v52, %v794_v51 }
 0x140   : > { %v838_v56 = vpack.c.bf16 %v793_v54, %v792_v53  ;;  %v1603_v57 = vpop.f32.mrb[40].mxu0 }
 0x141   : > { %v670_v58 = vadd.f32 %v1603_v57, %v2055_v42  ;;  %v661_v59 = vpop.f32.mrb[41].mxu0 }
 0x142   : > { %v662_v60 = vadd.f32 %v2055_v42, %v661_v59  ;;  %v1604_v61 = vpop.f32.mrb[42].mxu0  ;;  %1677 = vmatprep.mubr.bf16.mxu1 %v838_v56 }
 0x143   : > { %v673_v62 = vadd.f32 %v1604_v61, %v2055_v42  ;;  %v664_v63 = vpop.f32.mrb[43].mxu0  ;;  %1678 = vmatmul.mubr.bf16.gmra.mrb[32].mxu1 %v839_v55  ;;  %v798_v1 = vmax.f32 %v670_v58, 0.0 }
 0x144   : > { %v665_v0 = vadd.f32 %v2055_v42, %v664_v63  ;;  %v796_v3 = vmax.f32 %v662_v60, 0.0 }
 0x145   : > { %v799_v2 = vmax.f32 %v673_v62, 0.0 }
 0x146   : > { %v797_v4 = vmax.f32 %v665_v0, 0.0 }
 0x147   : > { %v841_v5 = vpack.c.bf16 %v799_v2, %v798_v1 }
 0x148   : > { %v840_v6 = vpack.c.bf16 %v797_v4, %v796_v3  ;;  %v1607_v7 = vpop.f32.mrb[44].mxu0 }
 0x149   : > { %v686_v8 = vadd.f32 %v1607_v7, %v2055_v42  ;;  %v677_v9 = vpop.f32.mrb[45].mxu0 }
 0x14a   : > { %v678_v10 = vadd.f32 %v2055_v42, %v677_v9  ;;  %v1608_v11 = vpop.f32.mrb[46].mxu0  ;;  %1681 = vmatprep.mubr.bf16.mxu1 %v840_v6 }
 0x14b   : > { %v689_v12 = vadd.f32 %v1608_v11, %v2055_v42  ;;  %v680_v13 = vpop.f32.mrb[47].mxu0  ;;  %1682 = vmatmul.mubr.bf16.gmra.mrb[36].mxu1 %v841_v5  ;;  %v802_v15 = vmax.f32 %v686_v8, 0.0 }
 0x14c   : > { %v681_v14 = vadd.f32 %v2055_v42, %v680_v13  ;;  %v800_v17 = vmax.f32 %v678_v10, 0.0 }
 0x14d   : > { %v803_v16 = vmax.f32 %v689_v12, 0.0 }
 0x14e   : > { %v801_v18 = vmax.f32 %v681_v14, 0.0  ;;  %v2125_v14 = vld [vmem:[%s2326_s4] ss:$0 sm:$0xff] }
 0x14f   : > { %v843_v19 = vpack.c.bf16 %v803_v16, %v802_v15 }
 0x150   : > { %v842_v20 = vpack.c.bf16 %v801_v18, %v800_v17  ;;  %v1611_v21 = vpop.f32.mrb[48].mxu0 }
 0x151   : > { %v702_v22 = vadd.f32 %v1611_v21, %v2055_v42  ;;  %v693_v23 = vpop.f32.mrb[49].mxu0 }
 0x152   : > { %v694_v24 = vadd.f32 %v2055_v42, %v693_v23  ;;  %v1612_v25 = vpop.f32.mrb[50].mxu0  ;;  %1685 = vmatprep.mubr.bf16.mxu1 %v842_v20 }
 0x153   : > { %v705_v26 = vadd.f32 %v1612_v25, %v2055_v42  ;;  %v696_v27 = vpop.f32.mrb[51].mxu0  ;;  %1686 = vmatmul.mubr.bf16.gmra.mrb[40].mxu1 %v843_v19  ;;  %v806_v29 = vmax.f32 %v702_v22, 0.0 }
 0x154   : > { %v697_v28 = vadd.f32 %v2055_v42, %v696_v27  ;;  %v804_v31 = vmax.f32 %v694_v24, 0.0 }
 0x155   : > { %v807_v30 = vmax.f32 %v705_v26, 0.0 }
 0x156   : > { %v805_v32 = vmax.f32 %v697_v28, 0.0 }
 0x157   : > { %v845_v33 = vpack.c.bf16 %v807_v30, %v806_v29 }
 0x158   : > { %v844_v34 = vpack.c.bf16 %v805_v32, %v804_v31  ;;  %v1615_v35 = vpop.f32.mrb[52].mxu0 }
 0x159   : > { %v718_v36 = vadd.f32 %v1615_v35, %v2055_v42  ;;  %v709_v37 = vpop.f32.mrb[53].mxu0 }
 0x15a   : > { %v710_v38 = vadd.f32 %v2055_v42, %v709_v37  ;;  %v1616_v39 = vpop.f32.mrb[54].mxu0  ;;  %1689 = vmatprep.mubr.bf16.mxu1 %v844_v34 }
 0x15b   : > { %v721_v40 = vadd.f32 %v1616_v39, %v2055_v42  ;;  %v712_v41 = vpop.f32.mrb[55].mxu0  ;;  %1690 = vmatmul.mubr.bf16.gmra.mrb[44].mxu1 %v845_v33  ;;  %v810_v44 = vmax.f32 %v718_v36, 0.0 }
 0x15c   : > { %v713_v43 = vadd.f32 %v2055_v42, %v712_v41  ;;  %v808_v46 = vmax.f32 %v710_v38, 0.0 }
 0x15d   : > { %v811_v45 = vmax.f32 %v721_v40, 0.0 }
 0x15e   : > { %v809_v47 = vmax.f32 %v713_v43, 0.0 }
 0x15f   : > { %v847_v48 = vpack.c.bf16 %v811_v45, %v810_v44 }
 0x160   : > { %v846_v49 = vpack.c.bf16 %v809_v47, %v808_v46  ;;  %v1619_v50 = vpop.f32.mrb[56].mxu0 }
 0x161   : > { %v734_v51 = vadd.f32 %v1619_v50, %v2055_v42  ;;  %v725_v52 = vpop.f32.mrb[57].mxu0 }
 0x162   : > { %v726_v53 = vadd.f32 %v2055_v42, %v725_v52  ;;  %v1620_v54 = vpop.f32.mrb[58].mxu0  ;;  %1693 = vmatprep.mubr.bf16.mxu1 %v846_v49 }
 0x163   : > { %v737_v55 = vadd.f32 %v1620_v54, %v2055_v42  ;;  %v728_v56 = vpop.f32.mrb[59].mxu0  ;;  %1694 = vmatmul.mubr.bf16.gmra.mrb[48].mxu1 %v847_v48  ;;  %v814_v58 = vmax.f32 %v734_v51, 0.0 }
 0x164   : > { %v729_v57 = vadd.f32 %v2055_v42, %v728_v56  ;;  %v812_v60 = vmax.f32 %v726_v53, 0.0 }
 0x165   : > { %v815_v59 = vmax.f32 %v737_v55, 0.0 }
 0x166   : > { %v813_v61 = vmax.f32 %v729_v57, 0.0 }
 0x167   : > { %v849_v62 = vpack.c.bf16 %v815_v59, %v814_v58 }
 0x168   : > { %v848_v63 = vpack.c.bf16 %v813_v61, %v812_v60  ;;  %v1623_v0 = vpop.f32.mrb[60].mxu0 }
 0x169   : > { %v750_v1 = vadd.f32 %v1623_v0, %v2055_v42  ;;  %v741_v2 = vpop.f32.mrb[61].mxu0 }
 0x16a   : > { %v742_v3 = vadd.f32 %v2055_v42, %v741_v2  ;;  %v1624_v4 = vpop.f32.mrb[62].mxu0  ;;  %1697 = vmatprep.mubr.bf16.mxu1 %v848_v63 }
 0x16b   : > { %v753_v5 = vadd.f32 %v1624_v4, %v2055_v42  ;;  %v744_v6 = vpop.f32.mrb[63].mxu0  ;;  %1698 = vmatmul.mubr.bf16.gmra.mrb[52].mxu1 %v849_v62  ;;  %v818_v8 = vmax.f32 %v750_v1, 0.0 }
 0x16c   : > { %v745_v7 = vadd.f32 %v2055_v42, %v744_v6  ;;  %v816_v10 = vmax.f32 %v742_v3, 0.0 }
 0x16d   : > { %v819_v9 = vmax.f32 %v753_v5, 0.0 }
 0x16e   : > { %v817_v11 = vmax.f32 %v745_v7, 0.0 }
 0x16f   : > { %v851_v12 = vpack.c.bf16 %v819_v9, %v818_v8 }
 0x170   : > { %v850_v13 = vpack.c.bf16 %v817_v11, %v816_v10 }
 0x172   : > { %1701 = vmatprep.mubr.bf16.mxu1 %v850_v13 }
 0x173   : > { %1702 = vmatmul.mubr.bf16.gmra.mrb[56].mxu1 %v851_v12 }
 0x1ce   : > { %v1643_v15 = vpop.f32.mrb[64].mxu0 }
 0x1cf   : > { %v966_v16 = vadd.f32 %v1643_v15, %v2125_v14  ;;  %v957_v42 = vpop.f32.mrb[65].mxu0 }
 0x1d0   : > { %v958_v17 = vadd.f32 %v2125_v14, %v957_v42  ;;  %v1644_v18 = vpop.f32.mrb[66].mxu0 }
 0x1d1   : > { %v1214_v19 = vmax.f32 %v966_v16, 0.0  ;;  %v969_v20 = vadd.f32 %v1644_v18, %v2125_v14  ;;  %v960_v21 = vpop.f32.mrb[67].mxu0 }
 0x1d2   : > { %v1212_v22 = vmax.f32 %v958_v17, 0.0  ;;  %v961_v23 = vadd.f32 %v2125_v14, %v960_v21 }
 0x1d3   : > { %1278 = vst [vmem:[%s2133_s6 + $0x10] sm:$0xff] %v1214_v19  ;;  %v1215_v24 = vmax.f32 %v969_v20, 0.0 }
 0x1d4   : > { %1276 = vst [vmem:[%s2133_s6] sm:$0xff] %v1212_v22  ;;  %v1213_v25 = vmax.f32 %v961_v23, 0.0 }
 0x1d5   : > { %1279 = vst [vmem:[%s2133_s6 + $0x18] sm:$0xff] %v1215_v24 }
 0x1d6   : > { %1277 = vst [vmem:[%s2133_s6 + $0x8] sm:$0xff] %v1213_v25  ;;  %v1647_v26 = vpop.f32.mrb[0].mxu1 }
 0x1d7   : > { %v982_v27 = vadd.f32 %v1647_v26, %v2125_v14  ;;  %v973_v28 = vpop.f32.mrb[1].mxu1 }
 0x1d8   : > { %v974_v29 = vadd.f32 %v2125_v14, %v973_v28  ;;  %v1648_v30 = vpop.f32.mrb[2].mxu1 }
 0x1d9   : > { %v1218_v31 = vmax.f32 %v982_v27, 0.0  ;;  %v985_v32 = vadd.f32 %v1648_v30, %v2125_v14  ;;  %v976_v33 = vpop.f32.mrb[3].mxu1 }
 0x1da   : > { %v1216_v34 = vmax.f32 %v974_v29, 0.0  ;;  %v977_v35 = vadd.f32 %v2125_v14, %v976_v33 }
 0x1db   : > { %1282 = vst [vmem:[%s2133_s6 + $0x30] sm:$0xff] %v1218_v31  ;;  %v1219_v36 = vmax.f32 %v985_v32, 0.0 }
 0x1dc   : > { %1280 = vst [vmem:[%s2133_s6 + $0x20] sm:$0xff] %v1216_v34  ;;  %v1217_v37 = vmax.f32 %v977_v35, 0.0 }
 0x1dd   : > { %1283 = vst [vmem:[%s2133_s6 + $0x38] sm:$0xff] %v1219_v36 }
 0x1de   : > { %1281 = vst [vmem:[%s2133_s6 + $0x28] sm:$0xff] %v1217_v37  ;;  %v1651_v38 = vpop.f32.mrb[4].mxu1 }
 0x1df   : > { %v998_v39 = vadd.f32 %v1651_v38, %v2125_v14  ;;  %v989_v40 = vpop.f32.mrb[5].mxu1 }
 0x1e0   : > { %v990_v41 = vadd.f32 %v2125_v14, %v989_v40  ;;  %v1652_v43 = vpop.f32.mrb[6].mxu1 }
 0x1e1   : > { %v1222_v44 = vmax.f32 %v998_v39, 0.0  ;;  %v1001_v45 = vadd.f32 %v1652_v43, %v2125_v14  ;;  %v992_v46 = vpop.f32.mrb[7].mxu1 }
 0x1e2   : > { %v1220_v47 = vmax.f32 %v990_v41, 0.0  ;;  %v993_v48 = vadd.f32 %v2125_v14, %v992_v46 }
 0x1e3   : > { %1286 = vst [vmem:[%s2133_s6 + $0x50] sm:$0xff] %v1222_v44  ;;  %v1223_v49 = vmax.f32 %v1001_v45, 0.0 }
 0x1e4   : > { %1284 = vst [vmem:[%s2133_s6 + $0x40] sm:$0xff] %v1220_v47  ;;  %v1221_v50 = vmax.f32 %v993_v48, 0.0 }
 0x1e5   : > { %1287 = vst [vmem:[%s2133_s6 + $0x58] sm:$0xff] %v1223_v49 }
 0x1e6   : > { %1285 = vst [vmem:[%s2133_s6 + $0x48] sm:$0xff] %v1221_v50  ;;  %v1655_v51 = vpop.f32.mrb[8].mxu1 }
 0x1e7   : > { %v1014_v52 = vadd.f32 %v1655_v51, %v2125_v14  ;;  %v1005_v53 = vpop.f32.mrb[9].mxu1 }
 0x1e8   : > { %v1006_v54 = vadd.f32 %v2125_v14, %v1005_v53  ;;  %v1656_v55 = vpop.f32.mrb[10].mxu1 }
 0x1e9   : > { %v1226_v56 = vmax.f32 %v1014_v52, 0.0  ;;  %v1017_v57 = vadd.f32 %v1656_v55, %v2125_v14  ;;  %v1008_v58 = vpop.f32.mrb[11].mxu1 }
 0x1ea   : > { %v1224_v59 = vmax.f32 %v1006_v54, 0.0  ;;  %v1009_v60 = vadd.f32 %v2125_v14, %v1008_v58 }
 0x1eb   : > { %1290 = vst [vmem:[%s2133_s6 + $0x70] sm:$0xff] %v1226_v56  ;;  %v1227_v61 = vmax.f32 %v1017_v57, 0.0 }
 0x1ec   : > { %1288 = vst [vmem:[%s2133_s6 + $0x60] sm:$0xff] %v1224_v59  ;;  %v1225_v62 = vmax.f32 %v1009_v60, 0.0 }
 0x1ed   : > { %1291 = vst [vmem:[%s2133_s6 + $0x78] sm:$0xff] %v1227_v61 }
 0x1ee   : > { %1289 = vst [vmem:[%s2133_s6 + $0x68] sm:$0xff] %v1225_v62  ;;  %v1659_v63 = vpop.f32.mrb[12].mxu1 }
 0x1ef   : > { %v1030_v0 = vadd.f32 %v1659_v63, %v2125_v14  ;;  %v1021_v1 = vpop.f32.mrb[13].mxu1 }
 0x1f0   : > { %v1022_v2 = vadd.f32 %v2125_v14, %v1021_v1  ;;  %v1660_v3 = vpop.f32.mrb[14].mxu1 }
 0x1f1   : > { %v1230_v4 = vmax.f32 %v1030_v0, 0.0  ;;  %v1033_v5 = vadd.f32 %v1660_v3, %v2125_v14  ;;  %v1024_v6 = vpop.f32.mrb[15].mxu1 }
 0x1f2   : > { %v1228_v7 = vmax.f32 %v1022_v2, 0.0  ;;  %v1025_v8 = vadd.f32 %v2125_v14, %v1024_v6 }
 0x1f3   : > { %1294 = vst [vmem:[%s2133_s6 + $0x90] sm:$0xff] %v1230_v4  ;;  %v1231_v9 = vmax.f32 %v1033_v5, 0.0 }
 0x1f4   : > { %1292 = vst [vmem:[%s2133_s6 + $0x80] sm:$0xff] %v1228_v7  ;;  %v1229_v10 = vmax.f32 %v1025_v8, 0.0 }
 0x1f5   : > { %1295 = vst [vmem:[%s2133_s6 + $0x98] sm:$0xff] %v1231_v9 }
 0x1f6   : > { %1293 = vst [vmem:[%s2133_s6 + $0x88] sm:$0xff] %v1229_v10  ;;  %v1663_v11 = vpop.f32.mrb[16].mxu1 }
 0x1f7   : > { %v1046_v12 = vadd.f32 %v1663_v11, %v2125_v14  ;;  %v1037_v13 = vpop.f32.mrb[17].mxu1 }
 0x1f8   : > { %v1038_v15 = vadd.f32 %v2125_v14, %v1037_v13  ;;  %v1664_v16 = vpop.f32.mrb[18].mxu1 }
 0x1f9   : > { %v1234_v42 = vmax.f32 %v1046_v12, 0.0  ;;  %v1049_v17 = vadd.f32 %v1664_v16, %v2125_v14  ;;  %v1040_v18 = vpop.f32.mrb[19].mxu1 }
 0x1fa   : > { %v1232_v19 = vmax.f32 %v1038_v15, 0.0  ;;  %v1041_v20 = vadd.f32 %v2125_v14, %v1040_v18 }
 0x1fb   : > { %1298 = vst [vmem:[%s2133_s6 + $0xb0] sm:$0xff] %v1234_v42  ;;  %v1235_v21 = vmax.f32 %v1049_v17, 0.0 }
 0x1fc   : > { %1296 = vst [vmem:[%s2133_s6 + $0xa0] sm:$0xff] %v1232_v19  ;;  %v1233_v22 = vmax.f32 %v1041_v20, 0.0 }
 0x1fd   : > { %1299 = vst [vmem:[%s2133_s6 + $0xb8] sm:$0xff] %v1235_v21 }
 0x1fe   : > { %1297 = vst [vmem:[%s2133_s6 + $0xa8] sm:$0xff] %v1233_v22  ;;  %v1667_v23 = vpop.f32.mrb[20].mxu1 }
 0x1ff   : > { %v1062_v24 = vadd.f32 %v1667_v23, %v2125_v14  ;;  %v1053_v25 = vpop.f32.mrb[21].mxu1 }
 0x200   : > { %v1054_v26 = vadd.f32 %v2125_v14, %v1053_v25  ;;  %v1668_v27 = vpop.f32.mrb[22].mxu1 }
 0x201   : > { %v1238_v28 = vmax.f32 %v1062_v24, 0.0  ;;  %v1065_v29 = vadd.f32 %v1668_v27, %v2125_v14  ;;  %v1056_v30 = vpop.f32.mrb[23].mxu1 }
 0x202   : > { %v1236_v31 = vmax.f32 %v1054_v26, 0.0  ;;  %v1057_v32 = vadd.f32 %v2125_v14, %v1056_v30 }
 0x203   : > { %1302 = vst [vmem:[%s2133_s6 + $0xd0] sm:$0xff] %v1238_v28  ;;  %v1239_v33 = vmax.f32 %v1065_v29, 0.0 }
 0x204   : > { %1300 = vst [vmem:[%s2133_s6 + $0xc0] sm:$0xff] %v1236_v31  ;;  %v1237_v34 = vmax.f32 %v1057_v32, 0.0 }
 0x205   : > { %1303 = vst [vmem:[%s2133_s6 + $0xd8] sm:$0xff] %v1239_v33 }
 0x206   : > { %1301 = vst [vmem:[%s2133_s6 + $0xc8] sm:$0xff] %v1237_v34  ;;  %v1671_v35 = vpop.f32.mrb[24].mxu1 }
 0x207   : > { %v1078_v36 = vadd.f32 %v1671_v35, %v2125_v14  ;;  %v1069_v37 = vpop.f32.mrb[25].mxu1 }
 0x208   : > { %v1070_v38 = vadd.f32 %v2125_v14, %v1069_v37  ;;  %v1672_v39 = vpop.f32.mrb[26].mxu1 }
 0x209   : > { %v1242_v40 = vmax.f32 %v1078_v36, 0.0  ;;  %v1081_v41 = vadd.f32 %v1672_v39, %v2125_v14  ;;  %v1072_v43 = vpop.f32.mrb[27].mxu1 }
 0x20a   : > { %v1240_v44 = vmax.f32 %v1070_v38, 0.0  ;;  %v1073_v45 = vadd.f32 %v2125_v14, %v1072_v43 }
 0x20b   : > { %1306 = vst [vmem:[%s2133_s6 + $0xf0] sm:$0xff] %v1242_v40  ;;  %v1243_v46 = vmax.f32 %v1081_v41, 0.0 }
 0x20c   : > { %1304 = vst [vmem:[%s2133_s6 + $0xe0] sm:$0xff] %v1240_v44  ;;  %v1241_v47 = vmax.f32 %v1073_v45, 0.0 }
 0x20d   : > { %1307 = vst [vmem:[%s2133_s6 + $0xf8] sm:$0xff] %v1243_v46 }
 0x20e   : > { %1305 = vst [vmem:[%s2133_s6 + $0xe8] sm:$0xff] %v1241_v47  ;;  %v1675_v48 = vpop.f32.mrb[28].mxu1 }
 0x20f   : > { %v1094_v49 = vadd.f32 %v1675_v48, %v2125_v14  ;;  %v1085_v50 = vpop.f32.mrb[29].mxu1 }
 0x210   : > { %v1086_v51 = vadd.f32 %v2125_v14, %v1085_v50  ;;  %v1676_v52 = vpop.f32.mrb[30].mxu1 }
 0x211   : > { %v1246_v53 = vmax.f32 %v1094_v49, 0.0  ;;  %v1097_v54 = vadd.f32 %v1676_v52, %v2125_v14  ;;  %v1088_v55 = vpop.f32.mrb[31].mxu1 }
 0x212   : > { %v1244_v56 = vmax.f32 %v1086_v51, 0.0  ;;  %v1089_v57 = vadd.f32 %v2125_v14, %v1088_v55 }
 0x213   : > { %1310 = vst [vmem:[%s2133_s6 + $0x110] sm:$0xff] %v1246_v53  ;;  %v1247_v58 = vmax.f32 %v1097_v54, 0.0 }
 0x214   : > { %1308 = vst [vmem:[%s2133_s6 + $0x100] sm:$0xff] %v1244_v56  ;;  %v1245_v59 = vmax.f32 %v1089_v57, 0.0 }
 0x215   : > { %1311 = vst [vmem:[%s2133_s6 + $0x118] sm:$0xff] %v1247_v58 }
 0x216   : > { %1309 = vst [vmem:[%s2133_s6 + $0x108] sm:$0xff] %v1245_v59  ;;  %v1679_v60 = vpop.f32.mrb[32].mxu1 }
 0x217   : > { %v1110_v61 = vadd.f32 %v1679_v60, %v2125_v14  ;;  %v1101_v62 = vpop.f32.mrb[33].mxu1 }
 0x218   : > { %v1102_v63 = vadd.f32 %v2125_v14, %v1101_v62  ;;  %v1680_v0 = vpop.f32.mrb[34].mxu1 }
 0x219   : > { %v1250_v1 = vmax.f32 %v1110_v61, 0.0  ;;  %v1113_v2 = vadd.f32 %v1680_v0, %v2125_v14  ;;  %v1104_v3 = vpop.f32.mrb[35].mxu1 }
 0x21a   : > { %v1248_v4 = vmax.f32 %v1102_v63, 0.0  ;;  %v1105_v5 = vadd.f32 %v2125_v14, %v1104_v3 }
 0x21b   : > { %1314 = vst [vmem:[%s2133_s6 + $0x130] sm:$0xff] %v1250_v1  ;;  %v1251_v6 = vmax.f32 %v1113_v2, 0.0 }
 0x21c   : > { %1312 = vst [vmem:[%s2133_s6 + $0x120] sm:$0xff] %v1248_v4  ;;  %v1249_v7 = vmax.f32 %v1105_v5, 0.0 }
 0x21d   : > { %1315 = vst [vmem:[%s2133_s6 + $0x138] sm:$0xff] %v1251_v6 }
 0x21e   : > { %1313 = vst [vmem:[%s2133_s6 + $0x128] sm:$0xff] %v1249_v7  ;;  %v1683_v8 = vpop.f32.mrb[36].mxu1 }
 0x21f   : > { %v1126_v9 = vadd.f32 %v1683_v8, %v2125_v14  ;;  %v1117_v10 = vpop.f32.mrb[37].mxu1 }
 0x220   : > { %v1118_v11 = vadd.f32 %v2125_v14, %v1117_v10  ;;  %v1684_v12 = vpop.f32.mrb[38].mxu1 }
 0x221   : > { %v1254_v13 = vmax.f32 %v1126_v9, 0.0  ;;  %v1129_v15 = vadd.f32 %v1684_v12, %v2125_v14  ;;  %v1120_v16 = vpop.f32.mrb[39].mxu1 }
 0x222   : > { %v1252_v42 = vmax.f32 %v1118_v11, 0.0  ;;  %v1121_v17 = vadd.f32 %v2125_v14, %v1120_v16 }
 0x223   : > { %1318 = vst [vmem:[%s2133_s6 + $0x150] sm:$0xff] %v1254_v13  ;;  %v1255_v18 = vmax.f32 %v1129_v15, 0.0 }
 0x224   : > { %1316 = vst [vmem:[%s2133_s6 + $0x140] sm:$0xff] %v1252_v42  ;;  %v1253_v19 = vmax.f32 %v1121_v17, 0.0 }
 0x225   : > { %1319 = vst [vmem:[%s2133_s6 + $0x158] sm:$0xff] %v1255_v18 }
 0x226   : > { %1317 = vst [vmem:[%s2133_s6 + $0x148] sm:$0xff] %v1253_v19  ;;  %v1687_v20 = vpop.f32.mrb[40].mxu1 }
 0x227   : > { %v1142_v21 = vadd.f32 %v1687_v20, %v2125_v14  ;;  %v1133_v22 = vpop.f32.mrb[41].mxu1 }
 0x228   : > { %v1134_v23 = vadd.f32 %v2125_v14, %v1133_v22  ;;  %v1688_v24 = vpop.f32.mrb[42].mxu1 }
 0x229   : > { %v1258_v25 = vmax.f32 %v1142_v21, 0.0  ;;  %v1145_v26 = vadd.f32 %v1688_v24, %v2125_v14  ;;  %v1136_v27 = vpop.f32.mrb[43].mxu1 }
 0x22a   : > { %v1256_v28 = vmax.f32 %v1134_v23, 0.0  ;;  %v1137_v29 = vadd.f32 %v2125_v14, %v1136_v27 }
 0x22b   : > { %1322 = vst [vmem:[%s2133_s6 + $0x170] sm:$0xff] %v1258_v25  ;;  %v1259_v30 = vmax.f32 %v1145_v26, 0.0 }
 0x22c   : > { %1320 = vst [vmem:[%s2133_s6 + $0x160] sm:$0xff] %v1256_v28  ;;  %v1257_v31 = vmax.f32 %v1137_v29, 0.0 }
 0x22d   : > { %1323 = vst [vmem:[%s2133_s6 + $0x178] sm:$0xff] %v1259_v30 }
 0x22e   : > { %1321 = vst [vmem:[%s2133_s6 + $0x168] sm:$0xff] %v1257_v31  ;;  %v1691_v32 = vpop.f32.mrb[44].mxu1 }
 0x22f   : > { %v1158_v33 = vadd.f32 %v1691_v32, %v2125_v14  ;;  %v1149_v34 = vpop.f32.mrb[45].mxu1 }
 0x230   : > { %v1150_v35 = vadd.f32 %v2125_v14, %v1149_v34  ;;  %v1692_v36 = vpop.f32.mrb[46].mxu1 }
 0x231   : > { %v1262_v37 = vmax.f32 %v1158_v33, 0.0  ;;  %v1161_v38 = vadd.f32 %v1692_v36, %v2125_v14  ;;  %v1152_v39 = vpop.f32.mrb[47].mxu1 }
 0x232   : > { %v1260_v40 = vmax.f32 %v1150_v35, 0.0  ;;  %v1153_v41 = vadd.f32 %v2125_v14, %v1152_v39 }
 0x233   : > { %1326 = vst [vmem:[%s2133_s6 + $0x190] sm:$0xff] %v1262_v37  ;;  %v1263_v43 = vmax.f32 %v1161_v38, 0.0 }
 0x234   : > { %1324 = vst [vmem:[%s2133_s6 + $0x180] sm:$0xff] %v1260_v40  ;;  %v1261_v44 = vmax.f32 %v1153_v41, 0.0 }
 0x235   : > { %1327 = vst [vmem:[%s2133_s6 + $0x198] sm:$0xff] %v1263_v43 }
 0x236   : > { %1325 = vst [vmem:[%s2133_s6 + $0x188] sm:$0xff] %v1261_v44  ;;  %v1695_v45 = vpop.f32.mrb[48].mxu1 }
 0x237   : > { %v1174_v46 = vadd.f32 %v1695_v45, %v2125_v14  ;;  %v1165_v47 = vpop.f32.mrb[49].mxu1 }
 0x238   : > { %v1166_v48 = vadd.f32 %v2125_v14, %v1165_v47  ;;  %v1696_v49 = vpop.f32.mrb[50].mxu1 }
 0x239   : > { %v1266_v50 = vmax.f32 %v1174_v46, 0.0  ;;  %v1177_v51 = vadd.f32 %v1696_v49, %v2125_v14  ;;  %v1168_v52 = vpop.f32.mrb[51].mxu1 }
 0x23a   : > { %v1264_v53 = vmax.f32 %v1166_v48, 0.0  ;;  %v1169_v54 = vadd.f32 %v2125_v14, %v1168_v52 }
 0x23b   : > { %1330 = vst [vmem:[%s2133_s6 + $0x1b0] sm:$0xff] %v1266_v50  ;;  %v1267_v55 = vmax.f32 %v1177_v51, 0.0 }
 0x23c   : > { %1328 = vst [vmem:[%s2133_s6 + $0x1a0] sm:$0xff] %v1264_v53  ;;  %v1265_v56 = vmax.f32 %v1169_v54, 0.0 }
 0x23d   : > { %1331 = vst [vmem:[%s2133_s6 + $0x1b8] sm:$0xff] %v1267_v55 }
 0x23e   : > { %1329 = vst [vmem:[%s2133_s6 + $0x1a8] sm:$0xff] %v1265_v56  ;;  %v1699_v57 = vpop.f32.mrb[52].mxu1 }
 0x23f   : > { %v1190_v58 = vadd.f32 %v1699_v57, %v2125_v14  ;;  %v1181_v59 = vpop.f32.mrb[53].mxu1 }
 0x240   : > { %v1182_v60 = vadd.f32 %v2125_v14, %v1181_v59  ;;  %v1700_v61 = vpop.f32.mrb[54].mxu1 }
 0x241   : > { %v1270_v62 = vmax.f32 %v1190_v58, 0.0  ;;  %v1193_v63 = vadd.f32 %v1700_v61, %v2125_v14  ;;  %v1184_v0 = vpop.f32.mrb[55].mxu1 }
 0x242   : > { %v1268_v1 = vmax.f32 %v1182_v60, 0.0  ;;  %v1185_v2 = vadd.f32 %v2125_v14, %v1184_v0 }
 0x243   : > { %1334 = vst [vmem:[%s2133_s6 + $0x1d0] sm:$0xff] %v1270_v62  ;;  %v1271_v3 = vmax.f32 %v1193_v63, 0.0 }
 0x244   : > { %1332 = vst [vmem:[%s2133_s6 + $0x1c0] sm:$0xff] %v1268_v1  ;;  %v1269_v4 = vmax.f32 %v1185_v2, 0.0 }
 0x245   : > { %1335 = vst [vmem:[%s2133_s6 + $0x1d8] sm:$0xff] %v1271_v3 }
 0x246   : > { %1333 = vst [vmem:[%s2133_s6 + $0x1c8] sm:$0xff] %v1269_v4  ;;  %v1703_v5 = vpop.f32.mrb[56].mxu1 }
 0x247   : > { %v1206_v6 = vadd.f32 %v1703_v5, %v2125_v14  ;;  %v1197_v7 = vpop.f32.mrb[57].mxu1 }
 0x248   : > { %v1198_v8 = vadd.f32 %v2125_v14, %v1197_v7  ;;  %v1704_v9 = vpop.f32.mrb[58].mxu1  ;;  %1347 = sbr.rel (!%p1906_p5) target bundleno = 619 (0x26b), region = 44 }
 0x249   : > { %v1274_v10 = vmax.f32 %v1206_v6, 0.0  ;;  %v1209_v11 = vadd.f32 %v1704_v9, %v2125_v14  ;;  %v1200_v12 = vpop.f32.mrb[59].mxu1 }
 0x24a   : > { %v1272_v13 = vmax.f32 %v1198_v8, 0.0  ;;  %v1201_v15 = vadd.f32 %v2125_v14, %v1200_v12 }
 0x24b   : > { %1338 = vst [vmem:[%s2133_s6 + $0x1f0] sm:$0xff] %v1274_v10  ;;  %v1275_v16 = vmax.f32 %v1209_v11, 0.0 }
 0x24c   : > { %1336 = vst [vmem:[%s2133_s6 + $0x1e0] sm:$0xff] %v1272_v13  ;;  %v1273_v42 = vmax.f32 %v1201_v15, 0.0 }
 0x24d   : > { %1339 = vst [vmem:[%s2133_s6 + $0x1f8] sm:$0xff] %v1275_v16 }
 0x24e   : > { %1337 = vst [vmem:[%s2133_s6 + $0x1e8] sm:$0xff] %v1273_v42 }
 0x24f   : > { %s2335_s9 = smov (!%p1350_p11, %s1349_s9), 64 }
 0x250   : > { %s2266_s10 = sshll.u32 %s2335_s9, 7 }
 0x251   : > { %s1354_s11 = ssub.s32 8192, %s2266_s10 }
 0x252   : > { %1355 = vsyncadd %s2261_s8, %s1354_s11  ;;  %p1476_p12 = scmp.ne.s32.totalorder %s2266_s10, 0  ;;  %s1482_s12 = sshll.u32 %s1889_s22, 13 }
 0x253   : > { %s2275_s14 = scalar_lea.hbm %s2327_s5, %s1482_s12  ;;  %s1360_s7 = sshll.u32 %s2133_s6, 4  ;;  %s2278_s7 = int_to_ptr.vmem [resolvable:$true] %s1360_s7 }
 0x254   : > { %s1771_s15 = scalar_lea.vmem %s2278_s7, %s2266_s10  ;;  %s1835_s16 = smov [#allocation2]  }
 0x255   : > { %p1772_p13 = scmp.ne.s32.totalorder %s2278_s7, %s1771_s15  ;;  %s1775_s17 = sshll.u32 %s1835_s16, 4  ;;  %s1776_s17 = int_to_ptr.vmem [resolvable:$false] %s1775_s17 }
 0x256   : > { %s1777_s22 = scalar_lea.vmem %s1776_s17, 16384  ;;  %p1778_p2 = scmp.lt.s32.totalorder %s2278_s7, %s1776_s17 }
 0x257   : > { %p1773_p0 = pnand %p1772_p13, %p1476_p12  ;;  %p1779_p3 = scmp.lt.s32.totalorder %s1777_s22, %s1771_s15 }
 0x259   : > { %p1774_p1 = pneg %p1773_p0  ;;  %p1780_p4 = por %p1779_p3, %p1778_p2 }
 0x25b   : > { %p1781_p5 = pnand %p1780_p4, %p1774_p1 }
 0x25d   : > { %1784 = shalt.err (!%p1781_p5)
}
 0x25e   : > { %s1785_s23 = scalar_lea.hbm %s2275_s14, %s2266_s10  ;;  %s1789_s30 = scalar_lea.hbm %s2327_s5, 16000 }
 0x25f   : > { %p1786_p7 = scmp.ne.s32.totalorder %s2275_s14, %s1785_s23  ;;  %p1790_p10 = scmp.lt.u32.totalorder %s2275_s14, %s2327_s5 }
 0x260   : > { %p1791_p11 = scmp.lt.u32.totalorder %s1789_s30, %s1785_s23  ;;  %p1793_p0 = scmp.lt.u32.totalorder %s1785_s23, %s2275_s14 }
 0x261   : > { %p1787_p8 = pnand %p1786_p7, %p1476_p12 }
 0x262   : > { %p1792_p13 = por %p1791_p11, %p1790_p10 }
 0x263   : > { %p1788_p9 = pneg %p1787_p8 }
 0x264   : > { %p1794_p1 = por %p1793_p0, %p1792_p13 }
 0x266   : > { %p1795_p2 = pnand %p1794_p1, %p1788_p9 }
 0x268   : > { %1798 = shalt.err (!%p1795_p2)
}
 0x269   : > { %s1836_s11 = smov 128   ;;  %s1837_s12 = smov 8  }
 0x26a   : > { %1366 = dma.vmem_to_hbm [thread:$0]  (%p1476_p12), %s2278_s7, %s2266_s10, %s2275_s14, %s2261_s8, %s1836_s11, %s1836_s11, %s1837_s12  }
 0x26b PF: > { %p1726_p3 = scmp.ge.s32.totalorder %s1833_s21, 2  ;;  %s1375_s13 = sand.u32 1, %s1821_s18  }
 0x26c   : > { %s1376_s28 = scalar_lea.sflag [#allocation3], %s1375_s13 }
 0x26d   : > { %p1723_p4 = pnand %p1726_p3, %p1910_p6 }
 0x26f   : > { %1816 = dma.done.wait (!%p1723_p4), %s1376_s28, 8192  }
 0x270   : > { %1818 = vsyncadd (!%p1723_p4), %s1376_s28, 4294959104  ;;  %p15_p5 = scmp.ge.s32.totalorder %s1893_s24, 4   ;;  %s2330_s18 = smov %s1825_s19 }
 0x271   : > { %s2331_s19 = smov %s1829_s20  ;;  %s2332_s20 = smov %s1904_s27 }
 0x272   : > { %s2333_s21 = smov %s1893_s24  ;;  %17 = sbr.rel (!%p15_p5) target bundleno = 3 (0x3), region = 75 }
 0x279   :  { %1381 = vsyncpa [#allocation3], 1 }
 0x27a   :  { %1383 = vsyncpa [#allocation3 + $0x1], 1 }

</bundles_post_ra>
